<compile_context>
chip_gen: v7x
topology: tpu7x:2x2x1
jax: 0.10.0
libtpu: 0.0.40
codegen_flags: <defaults>
</compile_context>

<pallas_src>
import functools

import jax
import jax.numpy as jnp
from jax.experimental import pallas as pl
from jax.experimental.pallas import tpu as pltpu


def surface_mlp_kernel(x_ref, y_ref, t_ref, w_in_ref, b_in_ref,
                       w_h_ref, b_h_ref, w_out_ref, b_out_ref, out_ref,
                       *, n_hidden, use_bf16_matmul):
    # x/y/t_ref : (1, tile_m)                lane-dense batch tiles
    # w_in_ref  : (n_nodes, 3)   b_in_ref  : (n_nodes, 1)
    # w_h_ref   : (L, n_nodes, n_nodes)      b_h_ref : (L, n_nodes, 1)
    # w_out_ref : (n_nodes, 1)   b_out_ref : (1, 1)
    # out_ref   : (1, tile_m)

    # Input layer Linear(3, n_nodes) + ReLU as three broadcast FMAs (VPU, no MXU).
    h = (w_in_ref[:, 0:1] * x_ref[...]
         + w_in_ref[:, 1:2] * y_ref[...]
         + w_in_ref[:, 2:3] * t_ref[...]
         + b_in_ref[...])                                   # (n_nodes, tile_m)
    h = jnp.maximum(h, 0.0)

    # Hidden layers: n_hidden x (Linear(n_nodes, n_nodes) + ReLU).
    # n_hidden is small & static -> unrolled python loop.  MXU N-dim = tile_m (full lanes).
    for l in range(n_hidden):
        if use_bf16_matmul:
            # MXU is bf16-native; keep the f32 accumulate + f32 bias/ReLU.
            hh = jnp.dot(w_h_ref[l].astype(jnp.bfloat16), h.astype(jnp.bfloat16),
                         preferred_element_type=jnp.float32)
        else:
            hh = jnp.dot(w_h_ref[l], h, preferred_element_type=jnp.float32)
        h = jnp.maximum(hh + b_h_ref[l], 0.0)

    # Output layer Linear(n_nodes, 1) on the VPU/XLU: per-lane multiply by the
    # (n_nodes, 1) weight column, then sublane-reduce over features.
    out_ref[...] = (jnp.sum(w_out_ref[...] * h, axis=0, keepdims=True)
                    + b_out_ref[...]).astype(out_ref.dtype)


def _round_up(v, m):
    return ((v + m - 1) // m) * m


def surface_mlp(x, y, t, params, *, n_hidden, tile_m=4096, use_bf16_matmul=False):
    """Runs SurfaceMLP.forward(x, y, t). x, y, t: float32 [N]. Returns [N, 1]."""
    w_in, b_in, w_h, b_h, w_out, b_out = params
    N = x.shape[0]
    n_nodes = w_in.shape[1]
    L = w_h.shape[0]

    # Adaptive batch tile: large (default 4096) for big N to amortize per-step
    # pipeline overhead and widen the lane-dense output; for small N shrink it so
    # the grid still has ~2 steps (keeps both v7x TensorCores busy, avoids one huge
    # mostly-padded tile).  Always a multiple of 512 (lane-aligned).
    tile_m = int(min(tile_m, max(512, _round_up(pl.cdiv(N, 2), 512))))
    n_tiles = pl.cdiv(N, tile_m)

    def prep(v):
        return v.astype(jnp.float32).reshape(1, N)   # lane-dense (1, N), no pad copy

    xr, yr, tr = prep(x), prep(y), prep(t)

    # Transpose the (tiny) weights/biases once into feature-major form.
    w_in_T = w_in.T                              # (n_nodes, 3)
    b_in_T = b_in.T                              # (n_nodes, 1)
    w_h_T = jnp.swapaxes(w_h, 1, 2)              # (L, n_nodes, n_nodes)
    b_h_T = jnp.swapaxes(b_h, 1, 2)              # (L, n_nodes, 1)
    w_out_c = w_out.reshape(n_nodes, 1)          # (n_nodes, 1) weight column
    b_out_T = b_out.reshape(1, 1)                # (1, 1)

    kernel = functools.partial(surface_mlp_kernel, n_hidden=n_hidden,
                               use_bf16_matmul=use_bf16_matmul)

    # Weights are tiny -> pass each as one full block, constant across the grid.
    def full(shape):
        return pl.BlockSpec(shape, lambda i, _s=shape: tuple(0 for _ in _s))

    batch_spec = pl.BlockSpec((1, tile_m), lambda i: (0, i))

    weight_bytes = sum(int(a.size) * 4 for a in
                       (w_in_T, b_in_T, w_h_T, b_h_T, w_out_c, b_out_T))

    # Explicit VMEM budget: double-buffered batch streams (x, y, t, out) +
    # live activation (x2 headroom for producer/consumer) + double-buffered weights.
    act_bytes = 4 * n_nodes * tile_m
    stream_bytes = 2 * 4 * 4 * tile_m
    vmem_est = 2 * act_bytes + stream_bytes + 2 * weight_bytes + (1 << 20)
    vmem_limit = int(min(max(vmem_est, 32 << 20), 56 << 20))   # fits v7x's 64 MiB

    flops = 2 * N * n_nodes * (3 + n_hidden * n_nodes + 1)
    bytes_accessed = 4 * (3 * N + N) + weight_bytes

    out = pl.pallas_call(
        kernel,
        out_shape=jax.ShapeDtypeStruct((1, N), jnp.float32),
        grid_spec=pltpu.PrefetchScalarGridSpec(
            num_scalar_prefetch=0,
            grid=(n_tiles,),
            in_specs=[
                batch_spec, batch_spec, batch_spec,          # x, y, t rows
                full((n_nodes, 3)),                          # w_in^T
                full((n_nodes, 1)),                          # b_in^T
                full((L, n_nodes, n_nodes)),                 # w_hidden^T
                full((L, n_nodes, 1)),                       # b_hidden^T
                full((n_nodes, 1)),                          # w_out column
                full((1, 1)),                                # b_out
            ],
            out_specs=batch_spec,                            # (1, tile_m) lane-dense
        ),
        compiler_params=pltpu.CompilerParams(
            dimension_semantics=("parallel",),
            vmem_limit_bytes=vmem_limit),
        cost_estimate=pl.CostEstimate(
            flops=flops, transcendentals=0, bytes_accessed=bytes_accessed),
    )(xr, yr, tr, w_in_T, b_in_T, w_h_T, b_h_T, w_out_c, b_out_T)

    return out.reshape(N, 1)


def init_params(key, n_hidden, n_nodes):
    """Deterministic synthetic init (PyTorch-style uniform fan-in scaling)."""
    ks = jax.random.split(key, 6)

    def lin(k, fan_in, fan_out):
        bound = 1.0 / jnp.sqrt(fan_in)
        kw, kb = jax.random.split(k)
        w = jax.random.uniform(kw, (fan_in, fan_out), jnp.float32, -bound, bound)
        b = jax.random.uniform(kb, (1, fan_out), jnp.float32, -bound, bound)
        return w, b

    w_in, b_in = lin(ks[0], 3, n_nodes)

    w_hs, b_hs = [], []
    hk = jax.random.split(ks[1], max(n_hidden, 1))
    for l in range(max(n_hidden, 1)):
        w, b = lin(hk[l], n_nodes, n_nodes)
        w_hs.append(w)
        b_hs.append(b)
    w_h = jnp.stack(w_hs, axis=0)                # [L, n_nodes, n_nodes]
    b_h = jnp.stack(b_hs, axis=0)                # [L, 1, n_nodes]

    w_out, b_out = lin(ks[2], n_nodes, 1)
    return w_in, b_in, w_h, b_h, w_out, b_out


def surface_mlp_ref(x, y, t, params, *, n_hidden):
    """Pure-JAX reference for correctness checking (batch-major, like PyTorch)."""
    w_in, b_in, w_h, b_h, w_out, b_out = params
    h = jnp.stack([x, y, t], axis=1)
    h = jnp.maximum(h @ w_in + b_in, 0.0)
    for l in range(n_hidden):
        h = jnp.maximum(h @ w_h[l] + b_h[l], 0.0)
    return h @ w_out + b_out


if __name__ == "__main__":
    N_HIDDEN = 2
    N_NODES = 32
    N = 1000           # not a multiple of the tile -> exercises the ragged-block path

    key = jax.random.PRNGKey(0)
    kx, ky, kt, kp = jax.random.split(key, 4)
    x = jax.random.normal(kx, (N,), jnp.float32)
    y = jax.random.normal(ky, (N,), jnp.float32)
    t = jax.random.normal(kt, (N,), jnp.float32)

    params = init_params(kp, N_HIDDEN, N_NODES)

    out = surface_mlp(x, y, t, params, n_hidden=N_HIDDEN)
    out = jax.block_until_ready(out)

    ref = surface_mlp_ref(x, y, t, params, n_hidden=N_HIDDEN)
    assert out.shape == (N, 1)
    assert jnp.allclose(out, ref, atol=1e-5, rtol=1e-5), "mismatch vs reference"

    print("KERNEL_OK")
</pallas_src>

<mosaic_0001>
module attributes {stable_mosaic.version = 11 : i64} {
  func.func @surface_mlp_kernel(%arg0: i32, %arg1: memref<1x512xf32, #tpu.memory_space<vmem>>, %arg2: memref<1x512xf32, #tpu.memory_space<vmem>>, %arg3: memref<1x512xf32, #tpu.memory_space<vmem>>, %arg4: memref<32x3xf32, #tpu.memory_space<vmem>>, %arg5: memref<32x1xf32, #tpu.memory_space<vmem>>, %arg6: memref<2x32x32xf32, #tpu.memory_space<vmem>>, %arg7: memref<2x32x1xf32, #tpu.memory_space<vmem>>, %arg8: memref<32x1xf32, #tpu.memory_space<vmem>>, %arg9: memref<1x1xf32, #tpu.memory_space<vmem>>, %arg10: memref<1x512xf32, #tpu.memory_space<vmem>>) attributes {dimension_semantics = [#tpu.dimension_semantics<parallel>], iteration_bounds = array<i64: 2>, scalar_prefetch = 0 : i64, scratch_operands = 0 : i64, tpu.core_type = #tpu.core_type<tc>, window_params = [{transform_indices = @transform_0, window_bounds = array<i64: 1, 512>}, {transform_indices = @transform_1, window_bounds = array<i64: 1, 512>}, {transform_indices = @transform_2, window_bounds = array<i64: 1, 512>}, {pipeline_mode = #tpu.pipeline_mode<synchronous>, transform_indices = @transform_3, window_bounds = array<i64: 32, 3>}, {pipeline_mode = #tpu.pipeline_mode<synchronous>, transform_indices = @transform_4, window_bounds = array<i64: 32, 1>}, {pipeline_mode = #tpu.pipeline_mode<synchronous>, transform_indices = @transform_5, window_bounds = array<i64: 2, 32, 32>}, {pipeline_mode = #tpu.pipeline_mode<synchronous>, transform_indices = @transform_6, window_bounds = array<i64: 2, 32, 1>}, {pipeline_mode = #tpu.pipeline_mode<synchronous>, transform_indices = @transform_7, window_bounds = array<i64: 32, 1>}, {pipeline_mode = #tpu.pipeline_mode<synchronous>, transform_indices = @transform_8, window_bounds = array<i64: 1, 1>}, {transform_indices = @transform_9, window_bounds = array<i64: 1, 512>}]} {
    %c0 = arith.constant 0 : index
    %c0_0 = arith.constant 0 : index
    %0 = vector.load %arg4[%c0, %c0_0] : memref<32x3xf32, #tpu.memory_space<vmem>>, vector<32x1xf32>
    %c0_1 = arith.constant 0 : index
    %c0_2 = arith.constant 0 : index
    %1 = vector.load %arg1[%c0_1, %c0_2] : memref<1x512xf32, #tpu.memory_space<vmem>>, vector<1x512xf32>
    %2 = vector.broadcast %0 : vector<32x1xf32> to vector<32x512xf32>
    %3 = vector.broadcast %1 : vector<1x512xf32> to vector<32x512xf32>
    %4 = arith.mulf %2, %3 : vector<32x512xf32>
    %c0_3 = arith.constant 0 : index
    %c1 = arith.constant 1 : index
    %5 = vector.load %arg4[%c0_3, %c1] : memref<32x3xf32, #tpu.memory_space<vmem>>, vector<32x1xf32>
    %c0_4 = arith.constant 0 : index
    %c0_5 = arith.constant 0 : index
    %6 = vector.load %arg2[%c0_4, %c0_5] : memref<1x512xf32, #tpu.memory_space<vmem>>, vector<1x512xf32>
    %7 = vector.broadcast %5 : vector<32x1xf32> to vector<32x512xf32>
    %8 = vector.broadcast %6 : vector<1x512xf32> to vector<32x512xf32>
    %9 = arith.mulf %7, %8 : vector<32x512xf32>
    %10 = arith.addf %4, %9 : vector<32x512xf32>
    %c0_6 = arith.constant 0 : index
    %c2 = arith.constant 2 : index
    %11 = vector.load %arg4[%c0_6, %c2] : memref<32x3xf32, #tpu.memory_space<vmem>>, vector<32x1xf32>
    %c0_7 = arith.constant 0 : index
    %c0_8 = arith.constant 0 : index
    %12 = vector.load %arg3[%c0_7, %c0_8] : memref<1x512xf32, #tpu.memory_space<vmem>>, vector<1x512xf32>
    %13 = vector.broadcast %11 : vector<32x1xf32> to vector<32x512xf32>
    %14 = vector.broadcast %12 : vector<1x512xf32> to vector<32x512xf32>
    %15 = arith.mulf %13, %14 : vector<32x512xf32>
    %16 = arith.addf %10, %15 : vector<32x512xf32>
    %c0_9 = arith.constant 0 : index
    %c0_10 = arith.constant 0 : index
    %17 = vector.load %arg5[%c0_9, %c0_10] : memref<32x1xf32, #tpu.memory_space<vmem>>, vector<32x1xf32>
    %18 = vector.broadcast %17 : vector<32x1xf32> to vector<32x512xf32>
    %19 = arith.addf %16, %18 : vector<32x512xf32>
    %cst = arith.constant 0.000000e+00 : f32
    %20 = vector.broadcast %cst : f32 to vector<32x512xf32>
    %21 = arith.maximumf %19, %20 : vector<32x512xf32>
    %c0_11 = arith.constant 0 : index
    %c0_12 = arith.constant 0 : index
    %c0_13 = arith.constant 0 : index
    %22 = vector.load %arg6[%c0_11, %c0_12, %c0_13] : memref<2x32x32xf32, #tpu.memory_space<vmem>>, vector<1x32x32xf32>
    %23 = vector.shape_cast %22 : vector<1x32x32xf32> to vector<32x32xf32>
    %cst_14 = arith.constant dense<0.000000e+00> : vector<32x512xf32>
    %24 = tpu.matmul %23, %21, %cst_14 {dimension_numbers = #tpu.dot_dimension_numbers<[1], [0], [0], [1], [0, 0, 1, 1], [], []>} : vector<32x32xf32>, vector<32x512xf32>, vector<32x512xf32> -> vector<32x512xf32>
    %c0_15 = arith.constant 0 : index
    %c0_16 = arith.constant 0 : index
    %c0_17 = arith.constant 0 : index
    %25 = vector.load %arg7[%c0_15, %c0_16, %c0_17] : memref<2x32x1xf32, #tpu.memory_space<vmem>>, vector<1x32x1xf32>
    %26 = vector.shape_cast %25 : vector<1x32x1xf32> to vector<32x1xf32>
    %27 = vector.broadcast %26 : vector<32x1xf32> to vector<32x512xf32>
    %28 = arith.addf %24, %27 : vector<32x512xf32>
    %cst_18 = arith.constant 0.000000e+00 : f32
    %29 = vector.broadcast %cst_18 : f32 to vector<32x512xf32>
    %30 = arith.maximumf %28, %29 : vector<32x512xf32>
    %c1_19 = arith.constant 1 : index
    %c0_20 = arith.constant 0 : index
    %c0_21 = arith.constant 0 : index
    %31 = vector.load %arg6[%c1_19, %c0_20, %c0_21] : memref<2x32x32xf32, #tpu.memory_space<vmem>>, vector<1x32x32xf32>
    %32 = vector.shape_cast %31 : vector<1x32x32xf32> to vector<32x32xf32>
    %cst_22 = arith.constant dense<0.000000e+00> : vector<32x512xf32>
    %33 = tpu.matmul %32, %30, %cst_22 {dimension_numbers = #tpu.dot_dimension_numbers<[1], [0], [0], [1], [0, 0, 1, 1], [], []>} : vector<32x32xf32>, vector<32x512xf32>, vector<32x512xf32> -> vector<32x512xf32>
    %c1_23 = arith.constant 1 : index
    %c0_24 = arith.constant 0 : index
    %c0_25 = arith.constant 0 : index
    %34 = vector.load %arg7[%c1_23, %c0_24, %c0_25] : memref<2x32x1xf32, #tpu.memory_space<vmem>>, vector<1x32x1xf32>
    %35 = vector.shape_cast %34 : vector<1x32x1xf32> to vector<32x1xf32>
    %36 = vector.broadcast %35 : vector<32x1xf32> to vector<32x512xf32>
    %37 = arith.addf %33, %36 : vector<32x512xf32>
    %cst_26 = arith.constant 0.000000e+00 : f32
    %38 = vector.broadcast %cst_26 : f32 to vector<32x512xf32>
    %39 = arith.maximumf %37, %38 : vector<32x512xf32>
    %c0_27 = arith.constant 0 : index
    %c0_28 = arith.constant 0 : index
    %40 = vector.load %arg8[%c0_27, %c0_28] : memref<32x1xf32, #tpu.memory_space<vmem>>, vector<32x1xf32>
    %41 = vector.broadcast %40 : vector<32x1xf32> to vector<32x512xf32>
    %42 = arith.mulf %41, %39 : vector<32x512xf32>
    %cst_29 = arith.constant dense<0.000000e+00> : vector<512xf32>
    %43 = vector.multi_reduction <add>, %42, %cst_29 [0] : vector<32x512xf32> to vector<512xf32>
    %44 = vector.shape_cast %43 : vector<512xf32> to vector<1x512xf32>
    %c0_30 = arith.constant 0 : index
    %c0_31 = arith.constant 0 : index
    %45 = vector.load %arg9[%c0_30, %c0_31] : memref<1x1xf32, #tpu.memory_space<vmem>>, vector<1x1xf32>
    %46 = vector.broadcast %45 : vector<1x1xf32> to vector<1x512xf32>
    %47 = arith.addf %44, %46 : vector<1x512xf32>
    %c0_32 = arith.constant 0 : index
    %c0_33 = arith.constant 0 : index
    %48 = vector.load %arg10[%c0_32, %c0_33] : memref<1x512xf32, #tpu.memory_space<vmem>>, vector<1x512xf32>
    tpu.vector_store %arg10[%c0_32, %c0_33], %47 {strides = array<i32>} : memref<1x512xf32, #tpu.memory_space<vmem>>, vector<1x512xf32>,
    return
  }
  func.func @transform_0(%arg0: i32) -> (i32, i32) {
    %c0_i32 = arith.constant 0 : i32
    %c0_i32_0 = arith.constant 0 : i32
    return %c0_i32, %arg0 : i32, i32
  }
  func.func @transform_1(%arg0: i32) -> (i32, i32) {
    %c0_i32 = arith.constant 0 : i32
    %c0_i32_0 = arith.constant 0 : i32
    return %c0_i32, %arg0 : i32, i32
  }
  func.func @transform_2(%arg0: i32) -> (i32, i32) {
    %c0_i32 = arith.constant 0 : i32
    %c0_i32_0 = arith.constant 0 : i32
    return %c0_i32, %arg0 : i32, i32
  }
  func.func @transform_3(%arg0: i32) -> (i32, i32) {
    %c0_i32 = arith.constant 0 : i32
    %c0_i32_0 = arith.constant 0 : i32
    %c0_i32_1 = arith.constant 0 : i32
    return %c0_i32, %c0_i32_0 : i32, i32
  }
  func.func @transform_4(%arg0: i32) -> (i32, i32) {
    %c0_i32 = arith.constant 0 : i32
    %c0_i32_0 = arith.constant 0 : i32
    %c0_i32_1 = arith.constant 0 : i32
    return %c0_i32, %c0_i32_0 : i32, i32
  }
  func.func @transform_5(%arg0: i32) -> (i32, i32, i32) {
    %c0_i32 = arith.constant 0 : i32
    %c0_i32_0 = arith.constant 0 : i32
    %c0_i32_1 = arith.constant 0 : i32
    %c0_i32_2 = arith.constant 0 : i32
    return %c0_i32, %c0_i32_0, %c0_i32_1 : i32, i32, i32
  }
  func.func @transform_6(%arg0: i32) -> (i32, i32, i32) {
    %c0_i32 = arith.constant 0 : i32
    %c0_i32_0 = arith.constant 0 : i32
    %c0_i32_1 = arith.constant 0 : i32
    %c0_i32_2 = arith.constant 0 : i32
    return %c0_i32, %c0_i32_0, %c0_i32_1 : i32, i32, i32
  }
  func.func @transform_7(%arg0: i32) -> (i32, i32) {
    %c0_i32 = arith.constant 0 : i32
    %c0_i32_0 = arith.constant 0 : i32
    %c0_i32_1 = arith.constant 0 : i32
    return %c0_i32, %c0_i32_0 : i32, i32
  }
  func.func @transform_8(%arg0: i32) -> (i32, i32) {
    %c0_i32 = arith.constant 0 : i32
    %c0_i32_0 = arith.constant 0 : i32
    %c0_i32_1 = arith.constant 0 : i32
    return %c0_i32, %c0_i32_0 : i32, i32
  }
  func.func @transform_9(%arg0: i32) -> (i32, i32) {
    %c0_i32 = arith.constant 0 : i32
    %c0_i32_0 = arith.constant 0 : i32
    return %c0_i32, %arg0 : i32, i32
  }
}

</mosaic_0001>

<bundles_post_ra>
// kernel: tpu_custom_call.1
= control target key start
LH: loop header
LB: loop body
LE: loop exit
PB: predicated region body
PF: predicated region fallthrough
CT: control target
= control target key end

     0   :  { %s1854_s0 = inlined_call_operand.vmem [shape: f32[1,1000], index: 0, kind: input, shape index: {}]   ;;  %s1855_s1 = inlined_call_operand.vmem [shape: f32[1,1000], index: 1, kind: input, shape index: {}]   ;;  %s1856_s2 = inlined_call_operand.vmem [shape: f32[1,1000], index: 2, kind: input, shape index: {}]   ;;  %s1857_s3 = inlined_call_operand.vmem [shape: f32[32,3], index: 3, kind: input, shape index: {}]   ;;  %s1858_s4 = inlined_call_operand.vmem [shape: f32[32,1], index: 4, kind: input, shape index: {}]   ;;  %s1859_s5 = inlined_call_operand.vmem [shape: f32[2,32,32], index: 5, kind: input, shape index: {}]   ;;  %s1860_s6 = inlined_call_operand.vmem [shape: f32[2,32,1], index: 6, kind: input, shape index: {}]   ;;  %s1861_s7 = inlined_call_operand.vmem [shape: f32[32,1], index: 7, kind: input, shape index: {}]   ;;  %s1862_s8 = inlined_call_operand.<no memory space> [shape: f32[1,1], index: 8, kind: input, shape index: {}]   ;;  %s1863_s9 = inlined_call_operand.hbm [shape: f32[1,1000], index: 9, kind: output, shape index: {}]  }
   0x1   :  { %v14_v0 = vstv %s1862_s8 }
   0x2   :  { %15 = vst [vmem:[#allocation2] sm:$0x1] %v14_v0 }
   0x3   :  { %16 = vsyncpa [#allocation4], 0 }
   0x4   :  { %18 = vsyncpa [#allocation4 + $0x1], 0  ;;  %s1558_s11 = smov 0   ;;  %s1560_s12 = smov 0  }
   0x5   :  { %s1562_s13 = smov 0   ;;  %s1564_s14 = smov 0  }
   0x6 LB: > { %s1579_s8 = sadd.s32 4294967295, %s1497_s14   ;;  %s1313_s15 = sadd.s32 4294967294, %s1497_s14   ;;  %s1497_s14 = sphi %s1564_s14, %s1869_s14   ;;  %s1493_s13 = sphi %s1562_s13, %s1868_s13   ;;  %s1489_s12 = sphi %s1560_s12, %s1867_s12   ;;  %s1485_s11 = sphi %s1558_s11, %s1866_s11  }
   0x7   : > { %s1583_s16 = sadd.s32 1, %s1497_s14   ;;  %s235_s17 = sadd.s32 1, %s1493_s13 }
   0x8   : > { %s232_s18 = ssub.s32 %s1497_s14, %s1583_s16  ;;  %p245_p0 = scmp.ne.s32.totalorder %s1493_s13, %s1489_s12 }
   0x9   : > { %p233_p1 = scmp.eq.s32.totalorder %s232_s18, 0  ;;  %p246_p2 = scmp.eq.s32.totalorder %s1579_s8, 1 }
   0xa   : > { %p251_p3 = scmp.ne.s32.totalorder %s1489_s12, %s1485_s11  ;;  %p252_p4 = scmp.eq.s32.totalorder %s1313_s15, 1 }
   0xb   : > { %s1594_s19 = scalar_select %p233_p1, %s1493_s13, %s235_s17  }
   0xc   : > { %p1596_p5 = por %p246_p2, %p245_p0  ;;  %p1600_p6 = por %p252_p4, %p251_p3 }
   0xd   : > { %p1316_p7 = scmp.ge.s32.totalorder %s1497_s14, 1  ;;  %p312_p8 = scmp.lt.s32.totalorder %s1497_s14, 3 }
   0xf   : > { %p313_p9 = pnand %p1316_p7, %p312_p8 }
  0x10   : > { %v371_v1 = vld [vmem:[%s1857_s3] sm:$0xff] (!%p313_p9)  ;;  %v1499_v2 = vmov (!%p313_p9), 2   ;;  %v1500_v3 = vmov (!%p313_p9), 1   ;;  %v373_v4 = vld [vmem:[%s1857_s3 + $0x10] sm:$0xff] (!%p313_p9)  ;;  %v372_v5 = vld [vmem:[%s1857_s3 + $0x8] sm:$0xff] (!%p313_p9)  ;;  %v1501_v6 = vmov (!%p313_p9), 0   ;;  %v397_v26 = vlaneseq (!%p313_p9) }
  0x11   : > { %316 = sbr.rel (%p313_p9) target bundleno = 701 (0x2bd), region = 56  ;;  %1428 = vset.pattern.permute.xlu0 (!%p313_p9), %v1499_v2  ;;  %1427 = vset.pattern.permute.xlu1 (!%p313_p9), %v1500_v3  ;;  %v374_v7 = vld [vmem:[%s1857_s3 + $0x18] sm:$0xff] (!%p313_p9)  ;;  %v574_v8 = vld [vmem:[%s1858_s4 + $0x8] sm:$0xff] (!%p313_p9)  ;;  %v633_v9 = vld [vmem:[%s1860_s6] sm:$0xff] (!%p313_p9)  ;;  %v1502_v22 = vmov (!%p313_p9), 0.0   ;;  %s1318_s23 = sshll.u32 (!%p313_p9), %s1579_s8, 2 }
  0x12   : > { %505 = vperm.xlu0 (!%p313_p9), %1428, %v371_v1   ;;  %435 = vperm.xlu1 (!%p313_p9), %1427, %v371_v1   ;;  %v635_v10 = vld [vmem:[%s1860_s6 + $0x10] sm:$0xff] (!%p313_p9)  ;;  %v1333_v11 = vld [vmem:[%s1860_s6 + $0x20] sm:$0xff] (!%p313_p9)  ;;  %v576_v16 = vld [vmem:[%s1858_s4 + $0x18] sm:$0xff] (!%p313_p9)  ;;  %p356_p10 = scmp.lt.s32.totalorder (!%p313_p9), %s1318_s23, 7  ;;  %v1670_v29 = vshrl.u32 (!%p313_p9), %v397_v26, 7  ;;  %vm657_vm0 = vcmask (!%p313_p9), 261120  }
  0x13   : > { %v573_v12 = vld [vmem:[%s1858_s4] sm:$0xff] (!%p313_p9)  ;;  %v1335_v13 = vld [vmem:[%s1860_s6 + $0x30] sm:$0xff] (!%p313_p9)  ;;  %v634_v18 = vld [vmem:[%s1860_s6 + $0x8] sm:$0xff] (!%p313_p9)  ;;  %734 = vmatprep.mubr.f32.mxu0 (!%p313_p9), %v1502_v22  ;;  %823 = vmatprep.mubr.f32.mxu1 (!%p313_p9), %v1502_v22  ;;  %s1350_s25 = sshll.u32 (!%p313_p9), %s1579_s8, 6  ;;  %vm1221_vm1 = vcmp.lt.s32.totalorder (!%p313_p9), %v397_v26, 512  ;;  %s1504_s8 = smov (!%p313_p9), [#allocation3]  }
  0x14   : > { %v575_v14 = vld [vmem:[%s1858_s4 + $0x10] sm:$0xff] (!%p313_p9)  ;;  %v1100_v15 = vld [vmem:[%s1861_s7] sm:$0xff] (!%p313_p9)  ;;  %v636_v20 = vld [vmem:[%s1860_s6 + $0x18] sm:$0xff] (!%p313_p9)  ;;  %v1676_v32 = vsub.s32 (!%p313_p9), 0, %v1670_v29  ;;  %v403_v33 = vsub.s32 (!%p313_p9), 1, %v1670_v29  ;;  %v407_v34 = vsub.s32 (!%p313_p9), 2, %v1670_v29  ;;  %s1812_s30 = scalar_lea.hbm (!%p313_p9), %s1863_s9, %s1350_s25 }
  0x15   : > { %v1102_v17 = vld [vmem:[%s1861_s7 + $0x10] sm:$0xff] (!%p313_p9)  ;;  %v1176_v19 = vld [vmem:[#allocation2] sm:$0x1] (!%p313_p9)  ;;  %v1334_v21 = vld [vmem:[%s1860_s6 + $0x28] sm:$0xff] (!%p313_p9)  ;;  %v411_v35 = vsub.s32 (!%p313_p9), 3, %v1670_v29  ;;  %s1439_s17 = sshll.u32 (!%p313_p9), %s1504_s8, 4  ;;  %s1440_s17 = int_to_ptr.vmem [resolvable:$false] %s1439_s17 }
  0x16   : > { %513 = vperm.xlu0 (!%p313_p9), %1428, %v373_v4   ;;  %439 = vperm.xlu1 (!%p313_p9), %1427, %v372_v5   ;;  %v1336_v23 = vld [vmem:[%s1860_s6 + $0x38] sm:$0xff] (!%p313_p9)  ;;  %v1101_v24 = vld [vmem:[%s1861_s7 + $0x8] sm:$0xff] (!%p313_p9)  ;;  %s1441_s18 = scalar_lea.vmem (!%p313_p9), %s1440_s17, 128 }
  0x17   : > { %v1103_v25 = vld [vmem:[%s1861_s7 + $0x18] sm:$0xff] (!%p313_p9) }
  0x18   : > { %s1871_s23 = smov (!%p356_p10, %s1318_s23), 7 }
  0x19   : > { %s363_s26 = scalar_lea.vmem %s1855_s1, %s1871_s23  ;;  %s368_s29 = scalar_lea.vmem %s1856_s2, %s1871_s23 }
  0x1a   : > { %1432 = vset.pattern.permute.xlu0 %v1501_v6  ;;  %1429 = vset.pattern.permute.xlu1 %v1499_v2  ;;  %v433_v36 = vld [vmem:[%s363_s26] sm:$0xf]  ;;  %s358_s15 = scalar_lea.vmem %s1854_s0, %s1871_s23  ;;  %s352_s23 = sand.u32 1, %s1489_s12  }
  0x1b   : > { %378 = vperm.xlu0 %1432, %v371_v1   ;;  %509 = vperm.xlu1 %1429, %v372_v5   ;;  %v503_v38 = vld [vmem:[%s368_s29] sm:$0xf]  ;;  %v1688_v40 = vrot.slane %v433_v36, %v1676_v32  ;;  %v1690_v41 = vrot.slane %v433_v36, %v403_v33  ;;  %v1692_v42 = vrot.slane %v433_v36, %v407_v34  ;;  %s1317_s24 = sshll.u32 %s352_s23, 2  ;;  %s1225_s10 = scalar_lea.sflag [#allocation4], %s352_s23 }
  0x1c   : > { %v1694_v43 = vrot.slane %v433_v36, %v411_v35  ;;  %v375_v44 = vld [vmem:[%s358_s15] sm:$0xf]  ;;  %v1697_v45 = vrot.slane %v503_v38, %v1676_v32  ;;  %v1699_v46 = vrot.slane %v503_v38, %v403_v33  ;;  %v1701_v47 = vrot.slane %v503_v38, %v407_v34  ;;  %s354_s26 = scalar_lea.vmem [#allocation3], %s1317_s24 }
  0x1d   : > { %v1703_v48 = vrot.slane %v503_v38, %v411_v35  ;;  %v400_v49 = vrot.slane %v375_v44, %v1676_v32  ;;  %v404_v50 = vrot.slane %v375_v44, %v403_v33  ;;  %v408_v51 = vrot.slane %v375_v44, %v407_v34  ;;  %s1239_s27 = sshll.u32 %s354_s26, 4  ;;  %s1814_s27 = int_to_ptr.vmem [resolvable:$true] %s1239_s27 }
  0x1e   : > { %v412_v52 = vrot.slane %v375_v44, %v411_v35  ;;  %s1435_s15 = scalar_lea.vmem %s1814_s27, 64  ;;  %p1442_p0 = scmp.lt.s32.totalorder %s1814_s27, %s1440_s17 }
  0x1f   : > { %383 = vperm.xlu0 %1432, %v372_v5   ;;  %1430 = vset.pattern.permute.xlu1 %v1501_v6  ;;  %p1436_p11 = scmp.ne.s32.totalorder %s1814_s27, %s1435_s15  ;;  %p1443_p1 = scmp.lt.s32.totalorder %s1441_s18, %s1435_s15 }
  0x20   : > { %388 = vperm.xlu1 %1430, %v373_v4  }
  0x21   : > { %p1437_p12 = pnand %p1436_p11, %p1596_p5  ;;  %p1444_p2 = por %p1443_p1, %p1442_p0 }
  0x23   : > { %393 = vperm.xlu0 %1432, %v374_v7   ;;  %p1438_p13 = pneg %p1437_p12 }
  0x24   : > { %1431 = vset.pattern.permute.xlu1 %v1500_v3 }
  0x25   : > { %443 = vperm.xlu1 %1431, %v373_v4   ;;  %p1445_p3 = pnand %p1444_p2, %p1438_p13 }
  0x27   : > { %584 = vperm.xlu0 %1432, %v574_v8  }
  0x29   : > { %447 = vperm.xlu1 %1431, %v374_v7  }
  0x2b   : > { %639 = vperm.xlu0 %1432, %v633_v9  }
  0x2d   : > { %1433 = vset.pattern.permute.xlu1 %v1499_v2 }
  0x2e   : > { %517 = vperm.xlu1 %1433, %v374_v7  }
  0x2f   : > { %649 = vperm.xlu0 %1432, %v635_v10  }
  0x32   : > { %1434 = vset.pattern.permute.xlu1 %v1501_v6 }
  0x33   : > { %876 = vperm.xlu0 %1432, %v1333_v11   ;;  %579 = vperm.xlu1 %1434, %v573_v12  }
  0x37   : > { %886 = vperm.xlu0 %1432, %v1335_v13   ;;  %589 = vperm.xlu1 %1434, %v575_v14  }
  0x3b   : > { %1106 = vperm.xlu0 %1432, %v1100_v15   ;;  %594 = vperm.xlu1 %1434, %v576_v16  }
  0x3f   : > { %1116 = vperm.xlu0 %1432, %v1102_v17   ;;  %644 = vperm.xlu1 %1434, %v634_v18  }
  0x43   : > { %1179 = vperm.xlu0 %1432, %v1176_v19   ;;  %654 = vperm.xlu1 %1434, %v636_v20  }
  0x47   : > { %881 = vperm.xlu1 %1434, %v1334_v21  }
  0x4b   : > { %891 = vperm.xlu1 %1434, %v1336_v23  }
  0x4f   : > { %1111 = vperm.xlu1 %1434, %v1101_v24  }
  0x53   : > { %1121 = vperm.xlu1 %1434, %v1103_v25  }
  0x91   : > { %v436_v27 = vpop.permute.xlu1 %435  ;;  %v506_v28 = vpop.permute.xlu0 %505 }
  0x92   : > { %v471_v54 = vmul.f32 %v1688_v40, %v436_v27  ;;  %v472_v55 = vmul.f32 %v1690_v41, %v436_v27  ;;  %v473_v56 = vmul.f32 %v1692_v42, %v436_v27  ;;  %v474_v57 = vmul.f32 %v1694_v43, %v436_v27 }
  0x93   : > { %v1711_v58 = vmul.f32 %v1697_v45, %v506_v28  ;;  %v542_v59 = vmul.f32 %v1699_v46, %v506_v28  ;;  %v1715_v60 = vmul.f32 %v1701_v47, %v506_v28  ;;  %v544_v61 = vmul.f32 %v1703_v48, %v506_v28 }
  0x95   : > { %v440_v30 = vpop.permute.xlu1 %439  ;;  %v514_v31 = vpop.permute.xlu0 %513 }
  0x96   : > { %v475_v63 = vmul.f32 %v1688_v40, %v440_v30  ;;  %v476_v0 = vmul.f32 %v1690_v41, %v440_v30  ;;  %v477_v1 = vmul.f32 %v1692_v42, %v440_v30  ;;  %v478_v2 = vmul.f32 %v1694_v43, %v440_v30 }
  0x97   : > { %v549_v12 = vmul.f32 %v1697_v45, %v514_v31  ;;  %v550_v13 = vmul.f32 %v1699_v46, %v514_v31  ;;  %v551_v14 = vmul.f32 %v1701_v47, %v514_v31  ;;  %v552_v15 = vmul.f32 %v1703_v48, %v514_v31 }
  0x9a   : > { %v510_v37 = vpop.permute.xlu1 %509  ;;  %v379_v39 = vpop.permute.xlu0 %378 }
  0x9b   : > { %v417_v3 = vmul.f32 %v400_v49, %v379_v39  ;;  %v418_v4 = vmul.f32 %v404_v50, %v379_v39  ;;  %v419_v5 = vmul.f32 %v408_v51, %v379_v39  ;;  %v420_v6 = vmul.f32 %v412_v52, %v379_v39 }
  0x9c   : > { %v545_v16 = vmul.f32 %v1697_v45, %v510_v37  ;;  %v546_v17 = vmul.f32 %v1699_v46, %v510_v37  ;;  %v547_v18 = vmul.f32 %v1701_v47, %v510_v37  ;;  %v548_v19 = vmul.f32 %v1703_v48, %v510_v37 }
  0x9d   : > { %v487_v20 = vadd.f32 %v471_v54, %v417_v3  ;;  %v489_v21 = vadd.f32 %v473_v56, %v419_v5  ;;  %v488_v24 = vadd.f32 %v472_v55, %v418_v4  ;;  %v490_v25 = vadd.f32 %v474_v57, %v420_v6 }
  0x9e   : > { %v384_v62 = vpop.permute.xlu0 %383 }
  0x9f   : > { %v389_v53 = vpop.permute.xlu1 %388  ;;  %v421_v7 = vmul.f32 %v400_v49, %v384_v62  ;;  %v422_v8 = vmul.f32 %v404_v50, %v384_v62  ;;  %v423_v9 = vmul.f32 %v408_v51, %v384_v62  ;;  %v424_v10 = vmul.f32 %v412_v52, %v384_v62 }
  0xa0   : > { %v425_v39 = vmul.f32 %v400_v49, %v389_v53  ;;  %v426_v37 = vmul.f32 %v404_v50, %v389_v53  ;;  %v427_v44 = vmul.f32 %v408_v51, %v389_v53  ;;  %v428_v54 = vmul.f32 %v412_v52, %v389_v53 }
  0xa1   : > { %v491_v27 = vadd.f32 %v475_v63, %v421_v7  ;;  %v493_v28 = vadd.f32 %v477_v1, %v423_v9  ;;  %v492_v33 = vadd.f32 %v476_v0, %v422_v8  ;;  %v494_v34 = vadd.f32 %v478_v2, %v424_v10 }
  0xa2   : > { %v394_v23 = vpop.permute.xlu0 %393 }
  0xa3   : > { %v429_v56 = vmul.f32 %v400_v49, %v394_v23  ;;  %v430_v55 = vmul.f32 %v404_v50, %v394_v23  ;;  %v431_v57 = vmul.f32 %v408_v51, %v394_v23  ;;  %v432_v62 = vmul.f32 %v412_v52, %v394_v23 }
  0xa4   : > { %v444_v11 = vpop.permute.xlu1 %443  ;;  %v562_v63 = vadd.f32 %v546_v17, %v492_v33  ;;  %v564_v1 = vadd.f32 %v548_v19, %v494_v34  ;;  %v561_v0 = vadd.f32 %v545_v16, %v491_v27  ;;  %v563_v2 = vadd.f32 %v547_v18, %v493_v28 }
  0xa5   : > { %v479_v31 = vmul.f32 %v1688_v40, %v444_v11  ;;  %v480_v35 = vmul.f32 %v1690_v41, %v444_v11  ;;  %v481_v36 = vmul.f32 %v1692_v42, %v444_v11  ;;  %v482_v38 = vmul.f32 %v1694_v43, %v444_v11 }
  0xa6   : > { %v585_v7 = vpop.permute.xlu0 %584  ;;  %v558_v50 = vadd.f32 %v542_v59, %v488_v24  ;;  %v560_v51 = vadd.f32 %v544_v61, %v490_v25  ;;  %v557_v52 = vadd.f32 %v1711_v58, %v487_v20  ;;  %v559_v11 = vadd.f32 %v1715_v60, %v489_v21 }
  0xa7   : > { %v495_v3 = vadd.f32 %v479_v31, %v425_v39  ;;  %v496_v4 = vadd.f32 %v480_v35, %v426_v37  ;;  %v497_v5 = vadd.f32 %v481_v36, %v427_v44  ;;  %v498_v6 = vadd.f32 %v482_v38, %v428_v54 }
  0xa8   : > { %v448_v30 = vpop.permute.xlu1 %447  ;;  %v602_v16 = vadd.f32 %v585_v7, %v562_v63  ;;  %v604_v17 = vadd.f32 %v585_v7, %v564_v1  ;;  %v601_v18 = vadd.f32 %v585_v7, %v561_v0  ;;  %v603_v19 = vadd.f32 %v585_v7, %v563_v2 }
  0xa9   : > { %v483_v9 = vmul.f32 %v1688_v40, %v448_v30  ;;  %v484_v10 = vmul.f32 %v1690_v41, %v448_v30  ;;  %v485_v53 = vmul.f32 %v1692_v42, %v448_v30  ;;  %v486_v49 = vmul.f32 %v1694_v43, %v448_v30 }
  0xaa   : > { %v565_v23 = vadd.f32 %v549_v12, %v495_v3  ;;  %v566_v27 = vadd.f32 %v550_v13, %v496_v4  ;;  %v567_v28 = vadd.f32 %v551_v14, %v497_v5  ;;  %v568_v40 = vadd.f32 %v552_v15, %v498_v6 }
  0xab   : > { %v499_v33 = vadd.f32 %v483_v9, %v429_v56  ;;  %v500_v41 = vadd.f32 %v484_v10, %v430_v55  ;;  %v501_v34 = vadd.f32 %v485_v53, %v431_v57  ;;  %v502_v42 = vadd.f32 %v486_v49, %v432_v62 }
  0xac   : > { %v618_v30 = vmax.f32 %v602_v16, 0.0  ;;  %v620_v35 = vmax.f32 %v604_v17, 0.0  ;;  %v617_v36 = vmax.f32 %v601_v18, 0.0  ;;  %v619_v38 = vmax.f32 %v603_v19, 0.0  ;;  %v630_v16 = vld [vmem:[%s1859_s5 + $0x8] sm:$0xff]  ;;  %v631_v17 = vld [vmem:[%s1859_s5 + $0x10] sm:$0xff] }
  0xad   : > { %v518_v8 = vpop.permute.xlu1 %517  ;;  %v632_v18 = vld [vmem:[%s1859_s5 + $0x18] sm:$0xff] }
  0xae   : > { %v553_v58 = vmul.f32 %v1697_v45, %v518_v8  ;;  %v554_v60 = vmul.f32 %v1699_v46, %v518_v8  ;;  %v555_v20 = vmul.f32 %v1701_v47, %v518_v8  ;;  %v556_v12 = vmul.f32 %v1703_v48, %v518_v8 }
  0xb0   : > { %v569_v47 = vadd.f32 %v553_v58, %v499_v33  ;;  %v570_v57 = vadd.f32 %v554_v60, %v500_v41  ;;  %v571_v48 = vadd.f32 %v555_v20, %v501_v34  ;;  %v572_v62 = vadd.f32 %v556_v12, %v502_v42 }
  0xb2   : > { %v580_v31 = vpop.permute.xlu1 %579 }
  0xb3   : > { %v598_v43 = vadd.f32 %v580_v31, %v558_v50  ;;  %v600_v59 = vadd.f32 %v580_v31, %v560_v51  ;;  %v597_v61 = vadd.f32 %v580_v31, %v557_v52  ;;  %v599_v24 = vadd.f32 %v580_v31, %v559_v11  ;;  %v629_v11 = vld [vmem:[%s1859_s5] sm:$0xff] }
  0xb5   : > { %v614_v13 = vmax.f32 %v598_v43, 0.0  ;;  %v616_v14 = vmax.f32 %v600_v59, 0.0  ;;  %v613_v15 = vmax.f32 %v597_v61, 0.0  ;;  %v615_v21 = vmax.f32 %v599_v24, 0.0 }
  0xb6   : > { %v590_v25 = vpop.permute.xlu1 %589 }
  0xb7   : > { %v605_v39 = vadd.f32 %v590_v25, %v565_v23  ;;  %v606_v37 = vadd.f32 %v590_v25, %v566_v27  ;;  %v607_v44 = vadd.f32 %v590_v25, %v567_v28  ;;  %v608_v54 = vadd.f32 %v590_v25, %v568_v40  ;;  %v640_v40 = vpop.permute.xlu0 %639 }
  0xb8   : > { %v1351_v45 = vpack.c.bf16 %v618_v30, %v614_v13  ;;  %v1359_v56 = vpack.c.bf16 %v620_v35, %v616_v14  ;;  %v1353_v46 = vpack.c.bf16 %v617_v36, %v613_v15  ;;  %v1361_v55 = vpack.c.bf16 %v619_v38, %v615_v21 }
  0xb9   : > { %v622_v4 = vmax.f32 %v606_v37, 0.0  ;;  %v624_v5 = vmax.f32 %v608_v54, 0.0  ;;  %v621_v6 = vmax.f32 %v605_v39, 0.0  ;;  %v623_v7 = vmax.f32 %v607_v44, 0.0 }
  0xba   : > { %1352 = vmatprep.subr.bf16.mxu0 %v1351_v45  ;;  %1360 = vmatprep.subr.bf16.mxu1 %v1359_v56  ;;  %v595_v63 = vpop.permute.xlu1 %594 }
  0xbb   : > { %v609_v1 = vadd.f32 %v595_v63, %v569_v47  ;;  %v610_v0 = vadd.f32 %v595_v63, %v570_v57  ;;  %v611_v2 = vadd.f32 %v595_v63, %v571_v48  ;;  %v612_v3 = vadd.f32 %v595_v63, %v572_v62  ;;  %1354 = vmatpush1.bf16.msra.mxu0 %v1353_v46  ;;  %v650_v56 = vpop.permute.xlu0 %649 }
  0xbc   : > { %1362 = vmatpush1.bf16.msra.mxu1 %v1361_v55 }
  0xbd   : > { %v626_v8 = vmax.f32 %v610_v0, 0.0  ;;  %v628_v9 = vmax.f32 %v612_v3, 0.0  ;;  %v625_v10 = vmax.f32 %v609_v1, 0.0  ;;  %v627_v53 = vmax.f32 %v611_v2, 0.0 }
  0xbe   : > { %v645_v33 = vpop.permute.xlu1 %644 }
  0xbf   : > { %v1355_v49 = vpack.c.bf16 %v626_v8, %v622_v4  ;;  %v1363_v50 = vpack.c.bf16 %v628_v9, %v624_v5  ;;  %v1357_v51 = vpack.c.bf16 %v625_v10, %v621_v6  ;;  %v1365_v52 = vpack.c.bf16 %v627_v53, %v623_v7 }
  0xc1   : > { %1356 = vmatprep.subr.bf16.mxu0 %v1355_v49  ;;  %1364 = vmatprep.subr.bf16.mxu1 %v1363_v50 }
  0xc2   : > { %1358 = vmatpush1.bf16.msra.mxu0 %v1357_v51  ;;  %1366 = vmatpush1.bf16.msra.mxu1 %v1365_v52  ;;  %v655_v47 = vpop.permute.xlu1 %654 }
  0xc5   : > { %1321 = vmatmul.mubr.msk.f32.vlgmr.msra.gmra.mrb[0].mxu0 %vm657_vm0, %v629_v11  ;;  %1325 = vmatmul.mubr.msk.f32.vlgmr.msra.gmra.mrb[0].mxu1 %vm657_vm0, %v629_v11 }
  0xc6   : > { %740 = vmatprep.mubr.f32.mxu0 %v1502_v22  ;;  %829 = vmatprep.mubr.f32.mxu1 %v1502_v22 }
  0xc9   : > { %1322 = vmatmul.mubr.msk.f32.gmra.mrb[2].mxu0 %vm657_vm0, %v630_v16  ;;  %1326 = vmatmul.mubr.msk.f32.gmra.mrb[2].mxu1 %vm657_vm0, %v630_v16 }
  0xca   : > { %746 = vmatprep.mubr.f32.mxu0 %v1502_v22  ;;  %835 = vmatprep.mubr.f32.mxu1 %v1502_v22 }
  0xcd   : > { %1323 = vmatmul.mubr.msk.f32.gmra.mrb[4].mxu0 %vm657_vm0, %v631_v17  ;;  %1327 = vmatmul.mubr.msk.f32.gmra.mrb[4].mxu1 %vm657_vm0, %v631_v17 }
  0xce   : > { %752 = vmatprep.mubr.f32.mxu0 %v1502_v22  ;;  %841 = vmatprep.mubr.f32.mxu1 %v1502_v22 }
  0xd1   : > { %1324 = vmatmul.mubr.msk.f32.gmra.mrb[6].mxu0 %vm657_vm0, %v632_v18  ;;  %1328 = vmatmul.mubr.msk.f32.gmra.mrb[6].mxu1 %vm657_vm0, %v632_v18 }
  0xd2   : > { %970 = vmatprep.mubr.f32.mxu0 %v1502_v22  ;;  %1059 = vmatprep.mubr.f32.mxu1 %v1502_v22 }
 0x198   : > { %v736_v19 = vpop.f32.mrb[0].mxu0  ;;  %v825_v23 = vpop.f32.mrb[0].mxu1 }
 0x199   : > { %v738_v27 = vpop.f32.mrb[1].mxu0  ;;  %v827_v28 = vpop.f32.mrb[1].mxu1  ;;  %v737_v41 = vadd.f32 %v736_v19, %v640_v40  ;;  %v826_v34 = vadd.f32 %v825_v23, %v640_v40  ;;  %v1329_v19 = vld [vmem:[%s1859_s5 + $0x20] sm:$0xff]  ;;  %v1330_v23 = vld [vmem:[%s1859_s5 + $0x28] sm:$0xff] }
 0x19a   : > { %v739_v42 = vadd.f32 %v738_v27, %v640_v40  ;;  %v828_v31 = vadd.f32 %v827_v28, %v640_v40  ;;  %v1331_v27 = vld [vmem:[%s1859_s5 + $0x30] sm:$0xff]  ;;  %v1332_v28 = vld [vmem:[%s1859_s5 + $0x38] sm:$0xff]  ;;  %v877_v40 = vpop.permute.xlu0 %876 }
 0x19b   : > { %v848_v13 = vmax.f32 %v737_v41, 0.0  ;;  %v850_v14 = vmax.f32 %v826_v34, 0.0 }
 0x19c   : > { %v742_v43 = vpop.f32.mrb[2].mxu0  ;;  %v831_v59 = vpop.f32.mrb[2].mxu1  ;;  %v849_v25 = vmax.f32 %v739_v42, 0.0  ;;  %v851_v30 = vmax.f32 %v828_v31, 0.0 }
 0x19d   : > { %v743_v61 = vadd.f32 %v742_v43, %v645_v33  ;;  %v832_v24 = vadd.f32 %v831_v59, %v645_v33  ;;  %v744_v58 = vpop.f32.mrb[3].mxu0  ;;  %v833_v60 = vpop.f32.mrb[3].mxu1 }
 0x19e   : > { %v745_v20 = vadd.f32 %v744_v58, %v645_v33  ;;  %v834_v12 = vadd.f32 %v833_v60, %v645_v33  ;;  %v882_v33 = vpop.permute.xlu1 %881  ;;  %v887_v41 = vpop.permute.xlu0 %886 }
 0x19f   : > { %v852_v15 = vmax.f32 %v743_v61, 0.0  ;;  %v854_v21 = vmax.f32 %v832_v24, 0.0 }
 0x1a0   : > { %v853_v35 = vmax.f32 %v745_v20, 0.0  ;;  %v855_v36 = vmax.f32 %v834_v12, 0.0  ;;  %v748_v38 = vpop.f32.mrb[4].mxu0  ;;  %v837_v39 = vpop.f32.mrb[4].mxu1 }
 0x1a1   : > { %v1369_v37 = vpack.c.bf16 %v852_v15, %v848_v13  ;;  %v1377_v44 = vpack.c.bf16 %v854_v21, %v850_v14  ;;  %v750_v54 = vpop.f32.mrb[5].mxu0  ;;  %v839_v45 = vpop.f32.mrb[5].mxu1  ;;  %v749_v57 = vadd.f32 %v748_v38, %v650_v56  ;;  %v838_v48 = vadd.f32 %v837_v39, %v650_v56 }
 0x1a2   : > { %v1367_v46 = vpack.c.bf16 %v853_v35, %v849_v25  ;;  %v1375_v55 = vpack.c.bf16 %v855_v36, %v851_v30  ;;  %v751_v62 = vadd.f32 %v750_v54, %v650_v56  ;;  %v840_v63 = vadd.f32 %v839_v45, %v650_v56  ;;  %v1798_v34 = vpop.permute.xlu1 %891  ;;  %v1107_v60 = vpop.permute.xlu0 %1106 }
 0x1a3   : > { %v856_v8 = vmax.f32 %v749_v57, 0.0  ;;  %v858_v9 = vmax.f32 %v838_v48, 0.0 }
 0x1a4   : > { %v754_v1 = vpop.f32.mrb[6].mxu0  ;;  %v843_v0 = vpop.f32.mrb[6].mxu1  ;;  %1368 = vmatprep.subr.bf16.mxu0 %v1367_v46  ;;  %1376 = vmatprep.subr.bf16.mxu1 %v1375_v55  ;;  %v857_v49 = vmax.f32 %v751_v62, 0.0  ;;  %v859_v50 = vmax.f32 %v840_v63, 0.0 }
 0x1a5   : > { %v755_v2 = vadd.f32 %v754_v1, %v655_v47  ;;  %v844_v3 = vadd.f32 %v843_v0, %v655_v47  ;;  %v756_v4 = vpop.f32.mrb[7].mxu0  ;;  %v845_v5 = vpop.f32.mrb[7].mxu1  ;;  %1370 = vmatpush1.bf16.msra.mxu0 %v1369_v37  ;;  %1378 = vmatpush1.bf16.msra.mxu1 %v1377_v44 }
 0x1a6   : > { %v757_v6 = vadd.f32 %v756_v4, %v655_v47  ;;  %v846_v7 = vadd.f32 %v845_v5, %v655_v47  ;;  %v1112_v37 = vpop.permute.xlu1 %1111 }
 0x1a7   : > { %v860_v10 = vmax.f32 %v755_v2, 0.0  ;;  %v862_v53 = vmax.f32 %v844_v3, 0.0 }
 0x1a8   : > { %v861_v51 = vmax.f32 %v757_v6, 0.0  ;;  %v863_v52 = vmax.f32 %v846_v7, 0.0 }
 0x1a9   : > { %v1373_v11 = vpack.c.bf16 %v860_v10, %v856_v8  ;;  %v1381_v16 = vpack.c.bf16 %v862_v53, %v858_v9  ;;  %v1117_v9 = vpop.permute.xlu0 %1116 }
 0x1aa   : > { %v1371_v17 = vpack.c.bf16 %v861_v51, %v857_v49  ;;  %v1379_v18 = vpack.c.bf16 %v863_v52, %v859_v50 }
 0x1ac   : > { %1372 = vmatprep.subr.bf16.mxu0 %v1371_v17  ;;  %1380 = vmatprep.subr.bf16.mxu1 %v1379_v18 }
 0x1ad   : > { %1374 = vmatpush1.bf16.msra.mxu0 %v1373_v11  ;;  %1382 = vmatpush1.bf16.msra.mxu1 %v1381_v16 }
 0x1b0   : > { %1337 = vmatmul.mubr.msk.f32.vlgmr.msra.gmra.mrb[8].mxu0 %vm657_vm0, %v1329_v19  ;;  %1341 = vmatmul.mubr.msk.f32.vlgmr.msra.gmra.mrb[8].mxu1 %vm657_vm0, %v1329_v19 }
 0x1b1   : > { %976 = vmatprep.mubr.f32.mxu0 %v1502_v22  ;;  %1065 = vmatprep.mubr.f32.mxu1 %v1502_v22 }
 0x1b4   : > { %1338 = vmatmul.mubr.msk.f32.gmra.mrb[10].mxu0 %vm657_vm0, %v1330_v23  ;;  %1342 = vmatmul.mubr.msk.f32.gmra.mrb[10].mxu1 %vm657_vm0, %v1330_v23 }
 0x1b5   : > { %982 = vmatprep.mubr.f32.mxu0 %v1502_v22  ;;  %1071 = vmatprep.mubr.f32.mxu1 %v1502_v22 }
 0x1b8   : > { %1339 = vmatmul.mubr.msk.f32.gmra.mrb[12].mxu0 %vm657_vm0, %v1331_v27  ;;  %1343 = vmatmul.mubr.msk.f32.gmra.mrb[12].mxu1 %vm657_vm0, %v1331_v27 }
 0x1b9   : > { %988 = vmatprep.mubr.f32.mxu0 %v1502_v22  ;;  %1077 = vmatprep.mubr.f32.mxu1 %v1502_v22 }
 0x1bc   : > { %1340 = vmatmul.mubr.msk.f32.gmra.mrb[14].mxu0 %vm657_vm0, %v1332_v28  ;;  %1344 = vmatmul.mubr.msk.f32.gmra.mrb[14].mxu1 %vm657_vm0, %v1332_v28 }
 0x283   : > { %v972_v42 = vpop.f32.mrb[8].mxu0  ;;  %v1061_v31 = vpop.f32.mrb[8].mxu1 }
 0x284   : > { %v973_v43 = vadd.f32 %v972_v42, %v877_v40  ;;  %v1062_v59 = vadd.f32 %v1061_v31, %v877_v40  ;;  %v974_v61 = vpop.f32.mrb[9].mxu0  ;;  %v1063_v24 = vpop.f32.mrb[9].mxu1 }
 0x285   : > { %v975_v22 = vadd.f32 %v974_v61, %v877_v40  ;;  %v1064_v58 = vadd.f32 %v1063_v24, %v877_v40 }
 0x286   : > { %v1084_v20 = vmax.f32 %v973_v43, 0.0  ;;  %v1086_v12 = vmax.f32 %v1062_v59, 0.0 }
 0x287   : > { %v1085_v13 = vmax.f32 %v975_v22, 0.0  ;;  %v1087_v14 = vmax.f32 %v1064_v58, 0.0  ;;  %v978_v15 = vpop.f32.mrb[10].mxu0  ;;  %v1067_v21 = vpop.f32.mrb[10].mxu1 }
 0x288   : > { %v979_v25 = vadd.f32 %v978_v15, %v882_v33  ;;  %v1068_v30 = vadd.f32 %v1067_v21, %v882_v33  ;;  %v980_v35 = vpop.f32.mrb[11].mxu0  ;;  %v1069_v36 = vpop.f32.mrb[11].mxu1  ;;  %v1124_v44 = vmul.f32 %v1107_v60, %v1084_v20  ;;  %v1126_v54 = vmul.f32 %v1107_v60, %v1086_v12 }
 0x289   : > { %v981_v38 = vadd.f32 %v980_v35, %v882_v33  ;;  %v1070_v39 = vadd.f32 %v1069_v36, %v882_v33  ;;  %v1125_v46 = vmul.f32 %v1107_v60, %v1085_v13  ;;  %v1127_v55 = vmul.f32 %v1107_v60, %v1087_v14  ;;  %v1122_v58 = vpop.permute.xlu1 %1121 }
 0x28a   : > { %v1088_v45 = vmax.f32 %v979_v25, 0.0  ;;  %v1090_v56 = vmax.f32 %v1068_v30, 0.0 }
 0x28b   : > { %v1089_v47 = vmax.f32 %v981_v38, 0.0  ;;  %v1091_v57 = vmax.f32 %v1070_v39, 0.0  ;;  %v984_v48 = vpop.f32.mrb[12].mxu0  ;;  %v1073_v62 = vpop.f32.mrb[12].mxu1 }
 0x28c   : > { %v1128_v63 = vmul.f32 %v1112_v37, %v1088_v45  ;;  %v1130_v1 = vmul.f32 %v1112_v37, %v1090_v56  ;;  %v985_v0 = vadd.f32 %v984_v48, %v887_v41  ;;  %v1074_v2 = vadd.f32 %v1073_v62, %v887_v41  ;;  %v986_v3 = vpop.f32.mrb[13].mxu0  ;;  %v1075_v4 = vpop.f32.mrb[13].mxu1 }
 0x28d   : > { %v1129_v5 = vmul.f32 %v1112_v37, %v1089_v47  ;;  %v1131_v6 = vmul.f32 %v1112_v37, %v1091_v57  ;;  %v987_v7 = vadd.f32 %v986_v3, %v887_v41  ;;  %v1076_v8 = vadd.f32 %v1075_v4, %v887_v41 }
 0x28e   : > { %v1140_v10 = vadd.f32 %v1128_v63, %v1124_v44  ;;  %v1158_v53 = vadd.f32 %v1130_v1, %v1126_v54  ;;  %v1092_v49 = vmax.f32 %v985_v0, 0.0  ;;  %v1094_v50 = vmax.f32 %v1074_v2, 0.0  ;;  %v1180_v2 = vpop.permute.xlu0 %1179 }
 0x28f   : > { %v1149_v51 = vadd.f32 %v1129_v5, %v1125_v46  ;;  %v1167_v52 = vadd.f32 %v1131_v6, %v1127_v55  ;;  %v1093_v11 = vmax.f32 %v987_v7, 0.0  ;;  %v1095_v16 = vmax.f32 %v1076_v8, 0.0  ;;  %v990_v17 = vpop.f32.mrb[14].mxu0  ;;  %v1079_v18 = vpop.f32.mrb[14].mxu1 }
 0x290   : > { %v1132_v19 = vmul.f32 %v1117_v9, %v1092_v49  ;;  %v1134_v23 = vmul.f32 %v1117_v9, %v1094_v50  ;;  %v991_v27 = vadd.f32 %v990_v17, %v1798_v34  ;;  %v1080_v28 = vadd.f32 %v1079_v18, %v1798_v34  ;;  %v992_v40 = vpop.f32.mrb[15].mxu0  ;;  %v1081_v33 = vpop.f32.mrb[15].mxu1 }
 0x291   : > { %v1133_v41 = vmul.f32 %v1117_v9, %v1093_v11  ;;  %v1135_v42 = vmul.f32 %v1117_v9, %v1095_v16  ;;  %v993_v31 = vadd.f32 %v992_v40, %v1798_v34  ;;  %v1082_v43 = vadd.f32 %v1081_v33, %v1798_v34 }
 0x292   : > { %v1141_v59 = vadd.f32 %v1140_v10, %v1132_v19  ;;  %v1159_v61 = vadd.f32 %v1158_v53, %v1134_v23  ;;  %v1096_v24 = vmax.f32 %v991_v27, 0.0  ;;  %v1098_v22 = vmax.f32 %v1080_v28, 0.0 }
 0x293   : > { %v1150_v60 = vadd.f32 %v1149_v51, %v1133_v41  ;;  %v1168_v20 = vadd.f32 %v1167_v52, %v1135_v42  ;;  %v1097_v12 = vmax.f32 %v993_v31, 0.0  ;;  %v1099_v13 = vmax.f32 %v1082_v43, 0.0 }
 0x294   : > { %v1136_v14 = vmul.f32 %v1122_v58, %v1096_v24  ;;  %v1138_v15 = vmul.f32 %v1122_v58, %v1098_v22  ;;  %v1503_v62 = vmov 1966171168   ;;  %v1185_v10 = vrot.slane %v1180_v2, %v1676_v32 }
 0x295   : > { %v1137_v21 = vmul.f32 %v1122_v58, %v1097_v12  ;;  %v1139_v25 = vmul.f32 %v1122_v58, %v1099_v13  ;;  %v1197_v63 = vunpack.c.l.s4 %v1503_v62 }
 0x296   : > { %v1142_v30 = vadd.f32 %v1141_v59, %v1136_v14  ;;  %v1160_v35 = vadd.f32 %v1159_v61, %v1138_v15 }
 0x297   : > { %v1151_v36 = vadd.f32 %v1150_v60, %v1137_v21  ;;  %v1169_v38 = vadd.f32 %v1168_v20, %v1139_v25  ;;  %v1198_v9 = vunpack.c.0.s8 %v1197_v63 }
 0x298   : > { %v1143_v39 = vrot.slane %v1142_v30, 4  ;;  %v1161_v37 = vrot.slane %v1160_v35, 4 }
 0x299   : > { %v1152_v34 = vrot.slane %v1151_v36, 4  ;;  %v1170_v44 = vrot.slane %v1169_v38, 4  ;;  %v1201_v18 = vsub.s32 %v1198_v9, %v1670_v29 }
 0x29a   : > { %v1144_v54 = vadd.f32 %v1143_v39, %v1142_v30  ;;  %v1162_v45 = vadd.f32 %v1161_v37, %v1160_v35 }
 0x29b   : > { %v1153_v56 = vadd.f32 %v1152_v34, %v1151_v36  ;;  %v1171_v46 = vadd.f32 %v1170_v44, %v1169_v38 }
 0x29c   : > { %v1145_v55 = vrot.slane %v1144_v54, 2  ;;  %v1163_v47 = vrot.slane %v1162_v45, 2 }
 0x29d   : > { %v1154_v57 = vrot.slane %v1153_v56, 2  ;;  %v1172_v48 = vrot.slane %v1171_v46, 2 }
 0x29e   : > { %v1146_v1 = vadd.f32 %v1145_v55, %v1144_v54  ;;  %v1164_v0 = vadd.f32 %v1163_v47, %v1162_v45 }
 0x29f   : > { %v1155_v3 = vadd.f32 %v1154_v57, %v1153_v56  ;;  %v1173_v4 = vadd.f32 %v1172_v48, %v1171_v46 }
 0x2a0   : > { %v1147_v5 = vrot.slane %v1146_v1, 1  ;;  %v1165_v6 = vrot.slane %v1164_v0, 1 }
 0x2a1   : > { %v1156_v7 = vrot.slane %v1155_v3, 1  ;;  %v1174_v8 = vrot.slane %v1173_v4, 1 }
 0x2a2   : > { %v1148_v53 = vadd.f32 %v1147_v5, %v1146_v1  ;;  %v1166_v49 = vadd.f32 %v1165_v6, %v1164_v0 }
 0x2a3   : > { %v1157_v50 = vadd.f32 %v1156_v7, %v1155_v3  ;;  %v1175_v51 = vadd.f32 %v1174_v8, %v1173_v4 }
 0x2a4   : > { %v1186_v52 = vadd.f32 %v1185_v10, %v1148_v53  ;;  %v1188_v11 = vadd.f32 %v1185_v10, %v1166_v49 }
 0x2a5   : > { %v1187_v16 = vadd.f32 %v1185_v10, %v1157_v50  ;;  %v1189_v17 = vadd.f32 %v1185_v10, %v1175_v51 }
 0x2a7   : > { %v1194_v19 = vcombine.low %v1186_v52, %v1187_v16  ;;  %v1195_v23 = vcombine.low %v1188_v11, %v1189_v17 }
 0x2a9   : > { %v1202_v27 = vrot.slane %v1194_v19, %v1201_v18  ;;  %v1209_v28 = vrot.slane %v1195_v23, %v1201_v18 }
 0x2ab   : > { %v1210_v32 = vcombine.low %v1202_v27, %v1209_v28 }
 0x2ad   : > { %v1217_v40 = vrot.slane %v1210_v32, %v1201_v18 }
 0x2af   : > { %1223 = vst.msk [vmem:[%s354_s26] sm:$0xf] %vm1221_vm1, %v1217_v40 }
 0x2b0   : > { %1448 = shalt.err (!%p1445_p3)
}
 0x2b1   : > { %s1449_s22 = scalar_lea.hbm %s1812_s30, 64  ;;  %s1453_s25 = scalar_lea.hbm %s1863_s9, 128 }
 0x2b2   : > { %p1450_p4 = scmp.ne.s32.totalorder %s1812_s30, %s1449_s22  ;;  %p1454_p9 = scmp.lt.u32.totalorder %s1812_s30, %s1863_s9 }
 0x2b3   : > { %p1455_p10 = scmp.lt.u32.totalorder %s1453_s25, %s1449_s22  ;;  %p1457_p12 = scmp.lt.u32.totalorder %s1449_s22, %s1812_s30 }
 0x2b4   : > { %p1451_p7 = pnand %p1450_p4, %p1596_p5 }
 0x2b5   : > { %p1456_p11 = por %p1455_p10, %p1454_p9 }
 0x2b6   : > { %p1452_p8 = pneg %p1451_p7 }
 0x2b7   : > { %p1458_p13 = por %p1457_p12, %p1456_p11 }
 0x2b9   : > { %p1459_p0 = pnand %p1458_p13, %p1452_p8 }
 0x2bb   : > { %1462 = shalt.err (!%p1459_p0)
}
 0x2bc   : > { %1383 = dma.vmem_to_hbm [thread:$0]  (%p1596_p5), %s1814_s27, 64, %s1812_s30, %s1225_s10  }
 0x2bd PF: > { %p1389_p1 = scmp.ge.s32.totalorder %s1497_s14, 2  ;;  %s1251_s29 = sand.u32 1, %s1485_s11  }
 0x2be   : > { %s1252_s15 = scalar_lea.sflag [#allocation4], %s1251_s29 }
 0x2bf   : > { %p1386_p2 = pnand %p1389_p1, %p1600_p6 }
 0x2c1   : > { %1480 = dma.done.wait (!%p1386_p2), %s1252_s15, 64  }
 0x2c2   : > { %1482 = vsyncadd (!%p1386_p2), %s1252_s15, 4294967232  ;;  %p21_p3 = scmp.ge.s32.totalorder %s1583_s16, 4   ;;  %s1866_s11 = smov %s1489_s12 }
 0x2c3   : > { %s1867_s12 = smov %s1493_s13  ;;  %s1868_s13 = smov %s1594_s19 }
 0x2c4   : > { %s1869_s14 = smov %s1583_s16  ;;  %23 = sbr.rel (!%p21_p3) target bundleno = 6 (0x6), region = 99 }
 0x2cb   :  { %1257 = vsyncpa [#allocation4], 1 }
 0x2cc   :  { %1259 = vsyncpa [#allocation4 + $0x1], 1 }

</bundles_post_ra>
